<compile_context>
chip_gen: v7x
topology: tpu7x:2x2x1
jax: 0.10.0
libtpu: 0.0.40
codegen_flags: <defaults>
</compile_context>

<pallas_src>
import functools

import jax
import jax.numpy as jnp
from jax.experimental import pallas as pl
from jax.experimental.pallas import tpu as pltpu

IN_FEATURES = 28 * 28     # 784
OUT_FEATURES = 10
K_PAD = 896               # 7 * 128  (lane-aligned K)
N_PAD = 128               # lane-dense output width
TM_MAX = 2048             # batch tile rows (bf16: multiple of 16)


def _round_up(x, m):
    return ((x + m - 1) // m) * m


def linear_kernel(x_ref, wt_ref, b_ref, o_ref):
    # x_ref:  [TM, K_PAD]  bf16
    # wt_ref: [K_PAD, N_PAD] bf16   (resident across grid steps)
    # b_ref:  [1, N_PAD]   f32      (resident across grid steps)
    # o_ref:  [TM, N_PAD]  f32
    acc = jnp.dot(x_ref[...], wt_ref[...], preferred_element_type=jnp.float32)
    o_ref[...] = acc + b_ref[...]


def _pack_params(weight, bias):
    """Fold transpose + pad + cast of the weight into one precomputable step."""
    wt = jnp.zeros((K_PAD, N_PAD), jnp.float32)
    wt = wt.at[:IN_FEATURES, :OUT_FEATURES].set(weight.T.astype(jnp.float32))
    wt = wt.astype(jnp.bfloat16)                                  # [896, 128]
    b2d = jnp.zeros((1, N_PAD), jnp.float32)
    b2d = b2d.at[0, :OUT_FEATURES].set(bias.astype(jnp.float32))  # [1, 128]
    return wt, b2d


@functools.partial(jax.jit, static_argnames=())
def perceptron_forward(x, weight, bias):
    """x: [B, 1, 28, 28] or [B, 784]; weight: [10, 784]; bias: [10]."""
    x2d = x.reshape(-1, IN_FEATURES)
    B = x2d.shape[0]

    # Batch tile: multiple of 16 (bf16 sublanes), capped at TM_MAX.
    tm = min(TM_MAX, _round_up(B, 16))
    b_pad = _round_up(B, tm)
    grid = (b_pad // tm,)

    # Pad activations to [b_pad, K_PAD] and cast to bf16 (zero padding keeps
    # the matmul result exact for the valid region).
    x_p = jnp.zeros((b_pad, K_PAD), jnp.float32)
    x_p = x_p.at[:B, :IN_FEATURES].set(x2d.astype(jnp.float32))
    x_p = x_p.astype(jnp.bfloat16)

    wt, b2d = _pack_params(weight, bias)

    cost = pl.CostEstimate(
        flops=2 * b_pad * K_PAD * N_PAD,
        transcendentals=0,
        bytes_accessed=b_pad * K_PAD * 2 + K_PAD * N_PAD * 2 + b_pad * N_PAD * 4,
    )

    out = pl.pallas_call(
        linear_kernel,
        out_shape=jax.ShapeDtypeStruct((b_pad, N_PAD), jnp.float32),
        grid_spec=pltpu.PrefetchScalarGridSpec(
            num_scalar_prefetch=0,
            grid=grid,
            in_specs=[
                pl.BlockSpec((tm, K_PAD), lambda i: (i, 0)),       # x tile streams
                pl.BlockSpec((K_PAD, N_PAD), lambda i: (0, 0)),    # weight resident
                pl.BlockSpec((1, N_PAD), lambda i: (0, 0)),        # bias resident
            ],
            out_specs=pl.BlockSpec((tm, N_PAD), lambda i: (i, 0)),
        ),
        compiler_params=pltpu.CompilerParams(
            dimension_semantics=("parallel",),
        ),
        cost_estimate=cost,
    )(x_p, wt, b2d)

    return out[:B, :OUT_FEATURES]


def init_params(key):
    # Mimic torch.nn.Linear default init: U(-1/sqrt(fan_in), 1/sqrt(fan_in))
    kw, kb = jax.random.split(key)
    bound = 1.0 / (IN_FEATURES ** 0.5)
    weight = jax.random.uniform(
        kw, (OUT_FEATURES, IN_FEATURES), jnp.float32, -bound, bound)
    bias = jax.random.uniform(
        kb, (OUT_FEATURES,), jnp.float32, -bound, bound)
    return weight, bias


if __name__ == "__main__":
    key = jax.random.PRNGKey(0)
    kx, kp = jax.random.split(key)

    B = 8
    x = jax.random.normal(kx, (B, 1, 28, 28), jnp.float32)   # NCHW MNIST-like
    weight, bias = init_params(kp)

    logits = perceptron_forward(x, weight, bias)
    logits = jax.block_until_ready(logits)

    # Correctness check against plain-JAX f32 reference (tolerance loosened
    # for the bf16 activation/weight cast; accumulation is f32).
    ref = x.reshape(-1, IN_FEATURES) @ weight.T + bias
    assert logits.shape == (B, OUT_FEATURES)
    assert jnp.allclose(logits, ref, atol=5e-2, rtol=5e-2), (
        float(jnp.max(jnp.abs(logits - ref))))

    print("KERNEL_OK")
</pallas_src>

<mosaic_0001>
module attributes {stable_mosaic.version = 11 : i64} {
  func.func @linear_kernel(%arg0: i32, %arg1: memref<16x896xbf16, #tpu.memory_space<vmem>>, %arg2: memref<896x128xbf16, #tpu.memory_space<vmem>>, %arg3: memref<1x128xf32, #tpu.memory_space<vmem>>, %arg4: memref<16x128xf32, #tpu.memory_space<vmem>>) attributes {dimension_semantics = [#tpu.dimension_semantics<parallel>], iteration_bounds = array<i64: 1>, scalar_prefetch = 0 : i64, scratch_operands = 0 : i64, tpu.core_type = #tpu.core_type<tc>, window_params = [{transform_indices = @transform_0, window_bounds = array<i64: 16, 896>}, {pipeline_mode = #tpu.pipeline_mode<synchronous>, transform_indices = @transform_1, window_bounds = array<i64: 896, 128>}, {pipeline_mode = #tpu.pipeline_mode<synchronous>, transform_indices = @transform_2, window_bounds = array<i64: 1, 128>}, {transform_indices = @transform_3, window_bounds = array<i64: 16, 128>}]} {
    %c0 = arith.constant 0 : index
    %c0_0 = arith.constant 0 : index
    %0 = vector.load %arg1[%c0, %c0_0] : memref<16x896xbf16, #tpu.memory_space<vmem>>, vector<16x896xbf16>
    %c0_1 = arith.constant 0 : index
    %c0_2 = arith.constant 0 : index
    %1 = vector.load %arg2[%c0_1, %c0_2] : memref<896x128xbf16, #tpu.memory_space<vmem>>, vector<896x128xbf16>
    %cst = arith.constant dense<0.000000e+00> : vector<16x128xf32>
    %2 = tpu.matmul %0, %1, %cst {dimension_numbers = #tpu.dot_dimension_numbers<[1], [0], [0], [1], [0, 0, 1, 1], [], []>} : vector<16x896xbf16>, vector<896x128xbf16>, vector<16x128xf32> -> vector<16x128xf32>
    %c0_3 = arith.constant 0 : index
    %c0_4 = arith.constant 0 : index
    %3 = vector.load %arg3[%c0_3, %c0_4] : memref<1x128xf32, #tpu.memory_space<vmem>>, vector<1x128xf32>
    %4 = vector.broadcast %3 : vector<1x128xf32> to vector<16x128xf32>
    %5 = arith.addf %2, %4 : vector<16x128xf32>
    %c0_5 = arith.constant 0 : index
    %c0_6 = arith.constant 0 : index
    %6 = vector.load %arg4[%c0_5, %c0_6] : memref<16x128xf32, #tpu.memory_space<vmem>>, vector<16x128xf32>
    tpu.vector_store %arg4[%c0_5, %c0_6], %5 {strides = array<i32>} : memref<16x128xf32, #tpu.memory_space<vmem>>, vector<16x128xf32>,
    return
  }
  func.func @transform_0(%arg0: i32) -> (i32, i32) {
    %c0_i32 = arith.constant 0 : i32
    %c0_i32_0 = arith.constant 0 : i32
    return %arg0, %c0_i32 : i32, i32
  }
  func.func @transform_1(%arg0: i32) -> (i32, i32) {
    %c0_i32 = arith.constant 0 : i32
    %c0_i32_0 = arith.constant 0 : i32
    %c0_i32_1 = arith.constant 0 : i32
    return %c0_i32, %c0_i32_0 : i32, i32
  }
  func.func @transform_2(%arg0: i32) -> (i32, i32) {
    %c0_i32 = arith.constant 0 : i32
    %c0_i32_0 = arith.constant 0 : i32
    %c0_i32_1 = arith.constant 0 : i32
    return %c0_i32, %c0_i32_0 : i32, i32
  }
  func.func @transform_3(%arg0: i32) -> (i32, i32) {
    %c0_i32 = arith.constant 0 : i32
    %c0_i32_0 = arith.constant 0 : i32
    return %arg0, %c0_i32 : i32, i32
  }
}

</mosaic_0001>

<bundles_post_ra>
// kernel: perceptron_forward.1
= control target key start
LH: loop header
LB: loop body
LE: loop exit
PB: predicated region body
PF: predicated region fallthrough
CT: control target
= control target key end

     0   :  { %v911_v38 = vmov 0.0   ;;  %vm912_vm0 = vmmov 0   ;;  %s1131_s1 = inlined_call_operand.vmem [shape: bf16[896,128], index: 1, kind: input, shape index: {}]   ;;  %s1132_s0 = inlined_call_operand.vmem [shape: bf16[16,896], index: 0, kind: input, shape index: {}]   ;;  %s1133_s2 = inlined_call_operand.vmem [shape: f32[1,128], index: 2, kind: input, shape index: {}]   ;;  %s1134_s3 = inlined_call_operand.vmem [shape: f32[16,128], index: 3, kind: output, shape index: {}]  }
   0x1   :  { %v845_v0 = vld [vmem:[%s1131_s1 + $0x40] sm:$0xff]   ;;  %v849_v4 = vld [vmem:[%s1131_s1 + $0x48] sm:$0xff]   ;;  %v853_v8 = vld [vmem:[%s1131_s1 + $0x50] sm:$0xff]  }
   0x2   :  { %v846_v1 = vld [vmem:[%s1131_s1] sm:$0xff]   ;;  %748 = vmatprep.subr.bf16.mxu0 %v845_v0  ;;  %v850_v5 = vld [vmem:[%s1131_s1 + $0x8] sm:$0xff]   ;;  %v854_v9 = vld [vmem:[%s1131_s1 + $0x10] sm:$0xff]  }
   0x3   :  { %v847_v2 = vld [vmem:[%s1131_s1 + $0xc0] sm:$0xff]   ;;  %749 = vmatpush3.bf16.msra.mxu0 %v846_v1  ;;  %v851_v6 = vld [vmem:[%s1131_s1 + $0xc8] sm:$0xff]   ;;  %v855_v10 = vld [vmem:[%s1131_s1 + $0xd0] sm:$0xff]  }
   0x4   :  { %v848_v3 = vld [vmem:[%s1131_s1 + $0x80] sm:$0xff]   ;;  %770 = vmatprep.subr.bf16.mxu1 %v847_v2  ;;  %750 = vmatprep.subr.bf16.mxu0 %v849_v4  ;;  %v852_v7 = vld [vmem:[%s1131_s1 + $0x88] sm:$0xff]   ;;  %v856_v11 = vld [vmem:[%s1131_s1 + $0x90] sm:$0xff]  }
   0x5   :  { %771 = vmatpush3.bf16.msra.mxu1 %v848_v3  ;;  %v857_v12 = vld [vmem:[%s1131_s1 + $0x58] sm:$0xff]   ;;  %v861_v16 = vld [vmem:[%s1131_s1 + $0x60] sm:$0xff]   ;;  %v865_v20 = vld [vmem:[%s1131_s1 + $0x68] sm:$0xff]  }
   0x6   :  { %772 = vmatprep.subr.bf16.mxu1 %v851_v6  ;;  %v858_v13 = vld [vmem:[%s1131_s1 + $0x18] sm:$0xff]   ;;  %v862_v17 = vld [vmem:[%s1131_s1 + $0x20] sm:$0xff]   ;;  %v866_v21 = vld [vmem:[%s1131_s1 + $0x28] sm:$0xff]  }
   0x7   :  { %751 = vmatpush3.bf16.msra.mxu0 %v850_v5  ;;  %v859_v14 = vld [vmem:[%s1131_s1 + $0xd8] sm:$0xff]   ;;  %v863_v18 = vld [vmem:[%s1131_s1 + $0xe0] sm:$0xff]   ;;  %v867_v22 = vld [vmem:[%s1131_s1 + $0xe8] sm:$0xff]  }
   0x8   :  { %752 = vmatprep.subr.bf16.mxu0 %v853_v8  ;;  %v860_v15 = vld [vmem:[%s1131_s1 + $0x98] sm:$0xff]   ;;  %v864_v19 = vld [vmem:[%s1131_s1 + $0xa0] sm:$0xff]   ;;  %v868_v23 = vld [vmem:[%s1131_s1 + $0xa8] sm:$0xff]  }
   0x9   :  { %773 = vmatpush3.bf16.msra.mxu1 %v852_v7  ;;  %v869_v24 = vld [vmem:[%s1131_s1 + $0x70] sm:$0xff]   ;;  %v873_v28 = vld [vmem:[%s1131_s1 + $0x78] sm:$0xff]   ;;  %v878_v32 = vld [vmem:[%s1132_s0 + $0x4] ss:$28 sps:$4 sm:$0xff]  }
   0xa   :  { %774 = vmatprep.subr.bf16.mxu1 %v855_v10  ;;  %v870_v25 = vld [vmem:[%s1131_s1 + $0x30] sm:$0xff]   ;;  %v874_v29 = vld [vmem:[%s1131_s1 + $0x38] sm:$0xff]   ;;  %546 = vmatprep.mubr.bf16.mxu0 %v878_v32  ;;  %v880_v34 = vld [vmem:[%s1131_s1 + $0x140] sm:$0xff]  }
   0xb   :  { %753 = vmatpush3.bf16.msra.mxu0 %v854_v9  ;;  %v871_v26 = vld [vmem:[%s1131_s1 + $0xf0] sm:$0xff]   ;;  %v875_v30 = vld [vmem:[%s1131_s1 + $0xf8] sm:$0xff]   ;;  %v881_v35 = vld [vmem:[%s1132_s0 + $0x8] ss:$28 sps:$4 sm:$0xff]  }
   0xc   :  { %754 = vmatprep.subr.bf16.mxu0 %v857_v12  ;;  %v872_v27 = vld [vmem:[%s1131_s1 + $0xb0] sm:$0xff]   ;;  %v876_v31 = vld [vmem:[%s1132_s0] ss:$28 sps:$4 sm:$0xff]   ;;  %v883_v36 = vld [vmem:[%s1132_s0 + $0xc] ss:$28 sps:$4 sm:$0xff]  }
   0xd   :  { %775 = vmatpush3.bf16.msra.mxu1 %v856_v11  ;;  %v879_v33 = vld [vmem:[%s1131_s1 + $0xb8] sm:$0xff]   ;;  %v884_v37 = vld [vmem:[%s1131_s1 + $0x100] sm:$0xff]   ;;  %587 = vmatprep.mubr.bf16.mxu1 %v883_v36  ;;  %v886_v40 = vld [vmem:[%s1131_s1 + $0x148] sm:$0xff]  }
   0xe   :  { %776 = vmatprep.subr.bf16.mxu1 %v859_v14  ;;  %v885_v39 = vld [vmem:[%s1131_s1 + $0x180] sm:$0xff]   ;;  %v887_v41 = vld [vmem:[%s1131_s1 + $0x108] sm:$0xff]   ;;  %v889_v43 = vld [vmem:[%s1131_s1 + $0x150] sm:$0xff]  }
   0xf   :  { %755 = vmatpush3.bf16.msra.mxu0 %v858_v13  ;;  %v888_v42 = vld [vmem:[%s1131_s1 + $0x188] sm:$0xff]   ;;  %v890_v44 = vld [vmem:[%s1131_s1 + $0x110] sm:$0xff]   ;;  %v892_v46 = vld [vmem:[%s1131_s1 + $0x158] sm:$0xff]  }
  0x10   :  { %756 = vmatprep.subr.bf16.mxu0 %v861_v16  ;;  %v891_v45 = vld [vmem:[%s1131_s1 + $0x190] sm:$0xff]   ;;  %v893_v47 = vld [vmem:[%s1131_s1 + $0x118] sm:$0xff]   ;;  %v895_v49 = vld [vmem:[%s1131_s1 + $0x160] sm:$0xff]  }
  0x11   :  { %777 = vmatpush3.bf16.msra.mxu1 %v860_v15  ;;  %v894_v48 = vld [vmem:[%s1131_s1 + $0x198] sm:$0xff]   ;;  %v896_v50 = vld [vmem:[%s1131_s1 + $0x120] sm:$0xff]   ;;  %v898_v52 = vld [vmem:[%s1131_s1 + $0x168] sm:$0xff]  }
  0x12   :  { %778 = vmatprep.subr.bf16.mxu1 %v863_v18  ;;  %v897_v51 = vld [vmem:[%s1131_s1 + $0x1a0] sm:$0xff]   ;;  %v899_v53 = vld [vmem:[%s1131_s1 + $0x128] sm:$0xff]   ;;  %v901_v55 = vld [vmem:[%s1131_s1 + $0x170] sm:$0xff]  }
  0x13   :  { %757 = vmatpush3.bf16.msra.mxu0 %v862_v17  ;;  %v900_v54 = vld [vmem:[%s1131_s1 + $0x1a8] sm:$0xff]   ;;  %v902_v56 = vld [vmem:[%s1131_s1 + $0x130] sm:$0xff]   ;;  %v904_v59 = vld [vmem:[%s1131_s1 + $0x178] sm:$0xff]  }
  0x14   :  { %758 = vmatprep.subr.bf16.mxu0 %v865_v20  ;;  %v903_v57 = vld [vmem:[%s1131_s1 + $0x1b0] sm:$0xff]   ;;  %v905_v60 = vld [vmem:[%s1131_s1 + $0x138] sm:$0xff]   ;;  %v684_v1 = vld [vmem:[%s1133_s2] ss:$0 sm:$0xff] }
  0x15   :  { %779 = vmatpush3.bf16.msra.mxu1 %v864_v19  ;;  %v908_v58 = vld [vmem:[%s1132_s0 + $0x14] ss:$28 sps:$4 sm:$0xff]   ;;  %v909_v61 = vld [vmem:[%s1131_s1 + $0x1b8] sm:$0xff]  }
  0x16   :  { %780 = vmatprep.subr.bf16.mxu1 %v867_v22  ;;  %v906_v62 = vld [vmem:[%s1132_s0 + $0x10] ss:$28 sps:$4 sm:$0xff]   ;;  %v910_v63 = vld [vmem:[%s1132_s0 + $0x18] ss:$28 sps:$4 sm:$0xff]  }
  0x17   :  { %759 = vmatpush3.bf16.msra.mxu0 %v866_v21 }
  0x18   :  { %760 = vmatprep.subr.bf16.mxu0 %v869_v24 }
  0x19   :  { %781 = vmatpush3.bf16.msra.mxu1 %v868_v23 }
  0x1a   :  { %782 = vmatprep.subr.bf16.mxu1 %v871_v26 }
  0x1b   :  { %761 = vmatpush3.bf16.msra.mxu0 %v870_v25 }
  0x1c   :  { %762 = vmatprep.subr.bf16.mxu0 %v873_v28 }
  0x1d   :  { %783 = vmatpush3.bf16.msra.mxu1 %v872_v27 }
  0x1e   :  { %784 = vmatprep.subr.bf16.mxu1 %v875_v30 }
  0x1f   :  { %763 = vmatpush3.bf16.msra.mxu0 %v874_v29 }
  0x20   :  { %792 = vmatprep.subr.bf16.mxu0 %v880_v34 }
  0x21   :  { %785 = vmatpush3.bf16.msra.mxu1 %v879_v33 }
  0x22   :  { %547 = vmatmul.mubr.bf16.vlgmr.msra.gmra.mrb[0].mxu0 %v876_v31  ;;  %823 = vmatprep.subr.bf16.mxu1 %v911_v38 }
  0x23   :  { %793 = vmatpush3.bf16.msra.mxu0 %v884_v37  ;;  %628 = vmatprep.mubr.bf16.mxu0 %v908_v58 }
  0x24   :  { %588 = vmatmul.mubr.bf16.vlgmr.msra.gmra.mrb[0].mxu1 %v881_v35  ;;  %794 = vmatprep.subr.bf16.mxu0 %v886_v40 }
  0x25   :  { %824 = vmatpush3.bf16.msra.mxu1 %v885_v39  ;;  %839 = vmatprep.mubr.msk.bf16.mxu1 %vm912_vm0, %v911_v38 }
  0x26   :  { %825 = vmatprep.subr.bf16.mxu1 %v911_v38 }
  0x27   :  { %795 = vmatpush3.bf16.msra.mxu0 %v887_v41 }
  0x28   :  { %796 = vmatprep.subr.bf16.mxu0 %v889_v43 }
  0x29   :  { %826 = vmatpush3.bf16.msra.mxu1 %v888_v42 }
  0x2a   :  { %827 = vmatprep.subr.bf16.mxu1 %v911_v38 }
  0x2b   :  { %797 = vmatpush3.bf16.msra.mxu0 %v890_v44 }
  0x2c   :  { %798 = vmatprep.subr.bf16.mxu0 %v892_v46 }
  0x2d   :  { %828 = vmatpush3.bf16.msra.mxu1 %v891_v45 }
  0x2e   :  { %829 = vmatprep.subr.bf16.mxu1 %v911_v38 }
  0x2f   :  { %799 = vmatpush3.bf16.msra.mxu0 %v893_v47 }
  0x30   :  { %800 = vmatprep.subr.bf16.mxu0 %v895_v49 }
  0x31   :  { %830 = vmatpush3.bf16.msra.mxu1 %v894_v48 }
  0x32   :  { %831 = vmatprep.subr.bf16.mxu1 %v911_v38 }
  0x33   :  { %801 = vmatpush3.bf16.msra.mxu0 %v896_v50 }
  0x34   :  { %802 = vmatprep.subr.bf16.mxu0 %v898_v52 }
  0x35   :  { %832 = vmatpush3.bf16.msra.mxu1 %v897_v51 }
  0x36   :  { %833 = vmatprep.subr.bf16.mxu1 %v911_v38 }
  0x37   :  { %803 = vmatpush3.bf16.msra.mxu0 %v899_v53 }
  0x38   :  { %804 = vmatprep.subr.bf16.mxu0 %v901_v55 }
  0x39   :  { %834 = vmatpush3.bf16.msra.mxu1 %v900_v54 }
  0x3a   :  { %835 = vmatprep.subr.bf16.mxu1 %v911_v38 }
  0x3b   :  { %805 = vmatpush3.bf16.msra.mxu0 %v902_v56 }
  0x3c   :  { %806 = vmatprep.subr.bf16.mxu0 %v904_v59 }
  0x3d   :  { %836 = vmatpush3.bf16.msra.mxu1 %v903_v57 }
  0x3e   :  { %837 = vmatprep.subr.bf16.mxu1 %v911_v38 }
  0x3f   :  { %807 = vmatpush3.bf16.msra.mxu0 %v905_v60 }
  0x41   :  { %838 = vmatpush3.bf16.msra.mxu1 %v909_v61 }
  0x42   :  { %629 = vmatmul.mubr.bf16.vlgmr.msra.gmra.mrb[4].mxu0 %v906_v62 }
  0x44   :  { %840 = vmatmul.mubr.bf16.vlgmr.msra.gmra.mrb[4].mxu1 %v910_v63 }
  0xf5   :  { %v764_v0 = vpop.f32.mrb[0].mxu0 }
  0xf6   :  { %v765_v2 = vpop.f32.mrb[1].mxu0 }
  0xf7   :  { %v766_v3 = vadd.f32 %v765_v2, %v764_v0  ;;  %v767_v4 = vpop.f32.mrb[2].mxu0  ;;  %v786_v5 = vpop.f32.mrb[0].mxu1 }
  0xf8   :  { %v768_v6 = vpop.f32.mrb[3].mxu0  ;;  %v787_v9 = vpop.f32.mrb[1].mxu1 }
  0xf9   :  { %v549_v7 = vadd.f32 %v766_v3, %v684_v1  ;;  %v769_v8 = vadd.f32 %v768_v6, %v767_v4  ;;  %v788_v10 = vadd.f32 %v787_v9, %v786_v5  ;;  %v789_v11 = vpop.f32.mrb[2].mxu1 }
  0xfa   :  { %v790_v13 = vpop.f32.mrb[3].mxu1 }
  0xfb   :  { %v552_v12 = vadd.f32 %v769_v8, %v684_v1  ;;  %v590_v14 = vadd.f32 %v788_v10, %v549_v7  ;;  %v791_v15 = vadd.f32 %v790_v13, %v789_v11 }
  0xfd   :  { %v593_v16 = vadd.f32 %v791_v15, %v552_v12 }
 0x115   :  { %v808_v17 = vpop.f32.mrb[4].mxu0 }
 0x116   :  { %v809_v18 = vpop.f32.mrb[5].mxu0 }
 0x117   :  { %v671_v19 = vpop.f32.mrb[4].mxu1  ;;  %v810_v20 = vadd.f32 %v809_v18, %v808_v17  ;;  %v811_v21 = vpop.f32.mrb[6].mxu0 }
 0x118   :  { %v841_v22 = vpop.f32.mrb[5].mxu1  ;;  %v812_v23 = vpop.f32.mrb[7].mxu0 }
 0x119   :  { %v674_v24 = vpop.f32.mrb[6].mxu1  ;;  %v631_v25 = vadd.f32 %v810_v20, %v590_v14  ;;  %v813_v26 = vadd.f32 %v812_v23, %v811_v21 }
 0x11a   :  { %v842_v27 = vpop.f32.mrb[7].mxu1 }
 0x11b   :  { %v672_v28 = vadd.f32 %v671_v19, %v631_v25  ;;  %v634_v29 = vadd.f32 %v813_v26, %v593_v16 }
 0x11d   :  { %678 = vst [vmem:[%s1134_s3] sm:$0xff] %v672_v28  ;;  %v675_v30 = vadd.f32 %v674_v24, %v634_v29 }
 0x11f   :  { %679 = vst [vmem:[%s1134_s3 + $0x8] sm:$0xff] %v675_v30 }

</bundles_post_ra>
